<compile_context>
chip_gen: v5e
topology: v5e:2x2
jax: 0.10.0
libtpu: 0.0.40
codegen_flags: <defaults>
</compile_context>

<pallas_src>
import jax
import jax.numpy as jnp
from jax.experimental import pallas as pl
from jax.experimental.pallas import tpu as pltpu


def decoder_kernel(x_ref, w1_ref, b1_ref, w2_ref, b2_ref, o_ref):
    # fc1: (tm, in) @ (in, hid) -> f32 accumulator on the MXU
    h = jnp.dot(x_ref[...], w1_ref[...], preferred_element_type=jnp.float32)
    # bias + ReLU on the f32 accumulator (VPU), no intermediate downcast
    h = jnp.maximum(h + b1_ref[...], 0.0)
    # fc2: (tm, hid) @ (hid, out) -> f32, bias add, store
    out = jnp.dot(h, w2_ref[...], preferred_element_type=jnp.float32)
    o_ref[...] = (out + b2_ref[...]).astype(o_ref.dtype)


def _round_up(n, m):
    return ((n + m - 1) // m) * m


def _cdiv(a, b):
    return -(-a // b)


def decoder_reference(x, w1, b1, w2, b2):
    return jnp.maximum(x @ w1 + b1, 0.0) @ w2 + b2


def decoder_forward(x, w1, b1, w2, b2, *, tm=4096, min_pallas_rows=256):
    """x: (B, in).  w1: (in, hid), b1: (1, hid), w2: (hid, out), b2: (1, out)."""
    B, in_dim = x.shape
    hid = w1.shape[1]
    out_dim = w2.shape[1]

    # Tiny batches: a single fused XLA expression beats the kernel launch cost.
    if B < min_pallas_rows:
        return decoder_reference(x, w1, b1, w2, b2)

    # --- batch tiling: sublane-aligned tile, partial last block handled by Pallas
    tm = min(tm, _round_up(B, 8))          # small batches -> one aligned block
    tm = max(tm, 8)
    nblocks = _cdiv(B, tm)
    # v7x megacore: make sure big batches yield at least 2 grid steps.
    if nblocks == 1 and B >= 2048:
        tm = _round_up(_cdiv(B, 2), 8)
        nblocks = _cdiv(B, tm)
    grid = (nblocks,)

    flops = 2 * B * in_dim * hid + 2 * B * hid * out_dim + 2 * B * hid
    bytes_accessed = 4 * (B * in_dim + in_dim * hid + hid
                          + hid * out_dim + out_dim + B * out_dim)

    out = pl.pallas_call(
        decoder_kernel,
        out_shape=jax.ShapeDtypeStruct((B, out_dim), jnp.float32),
        grid=grid,
        in_specs=[
            pl.BlockSpec((tm, in_dim), lambda i: (i, 0)),    # x: streamed
            pl.BlockSpec((in_dim, hid), lambda i: (0, 0)),   # w1: resident
            pl.BlockSpec((1, hid), lambda i: (0, 0)),        # b1: resident
            pl.BlockSpec((hid, out_dim), lambda i: (0, 0)),  # w2: resident
            pl.BlockSpec((1, out_dim), lambda i: (0, 0)),    # b2: resident
        ],
        out_specs=pl.BlockSpec((tm, out_dim), lambda i: (i, 0)),
        compiler_params=pltpu.CompilerParams(
            # TODO(synk): sweep pltpu.CORE_PARALLEL on v7x; plain "parallel" is
            # kept here as the known-safe setting on single-TC chips.
            dimension_semantics=("parallel",),
            vmem_limit_bytes=32 << 20,       # lift v5e's 16 MiB scoped default
        ),
        cost_estimate=pl.CostEstimate(
            flops=flops, transcendentals=0, bytes_accessed=bytes_accessed),
    )(x, w1, b1, w2, b2)

    return out


def init_params(key, input_dim=8, hidden_dim=16, output_dim=6):
    # Deterministic init mimicking nn.Linear's U(-1/sqrt(fan_in), 1/sqrt(fan_in)).
    k1, k2, k3, k4 = jax.random.split(key, 4)
    bound1 = 1.0 / (input_dim ** 0.5)
    bound2 = 1.0 / (hidden_dim ** 0.5)
    # stored as (in, out) == transpose of torch's (out, in)
    w1 = jax.random.uniform(k1, (input_dim, hidden_dim), jnp.float32, -bound1, bound1)
    b1 = jax.random.uniform(k2, (1, hidden_dim), jnp.float32, -bound1, bound1)
    w2 = jax.random.uniform(k3, (hidden_dim, output_dim), jnp.float32, -bound2, bound2)
    b2 = jax.random.uniform(k4, (1, output_dim), jnp.float32, -bound2, bound2)
    return w1, b1, w2, b2


if __name__ == "__main__":
    key = jax.random.PRNGKey(0)
    k_x, k_x2, k_p = jax.random.split(key, 3)

    input_dim, hidden_dim, output_dim = 8, 16, 6
    w1, b1, w2, b2 = init_params(k_p, input_dim, hidden_dim, output_dim)

    # Small demo batch, forced through the Pallas kernel.
    batch = 8
    x = jax.random.normal(k_x, (batch, input_dim), jnp.float32)
    out = decoder_forward(x, w1, b1, w2, b2, min_pallas_rows=0)
    jax.block_until_ready(out)
    ref = decoder_reference(x, w1, b1, w2, b2)
    assert out.shape == (batch, output_dim)
    assert jnp.allclose(out, ref, atol=1e-5, rtol=1e-5)

    # Ragged batch (not a multiple of the tile): exercises the partial last
    # block that replaced the old wrapper-side jnp.pad.
    batch2 = 1003
    x2 = jax.random.normal(k_x2, (batch2, input_dim), jnp.float32)
    out2 = decoder_forward(x2, w1, b1, w2, b2, tm=512, min_pallas_rows=0)
    jax.block_until_ready(out2)
    ref2 = decoder_reference(x2, w1, b1, w2, b2)
    assert out2.shape == (batch2, output_dim)
    assert jnp.allclose(out2, ref2, atol=1e-5, rtol=1e-5)

    print("KERNEL_OK")
</pallas_src>

<mosaic_0001>
module attributes {stable_mosaic.version = 11 : i64} {
  func.func @decoder_kernel(%arg0: i32, %arg1: memref<8x8xf32, #tpu.memory_space<vmem>>, %arg2: memref<8x16xf32, #tpu.memory_space<vmem>>, %arg3: memref<1x16xf32, #tpu.memory_space<vmem>>, %arg4: memref<16x6xf32, #tpu.memory_space<vmem>>, %arg5: memref<1x6xf32, #tpu.memory_space<vmem>>, %arg6: memref<8x6xf32, #tpu.memory_space<vmem>>) attributes {dimension_semantics = [#tpu.dimension_semantics<parallel>], iteration_bounds = array<i64: 1>, scalar_prefetch = 0 : i64, scratch_operands = 0 : i64, tpu.core_type = #tpu.core_type<tc>, window_params = [{transform_indices = @transform_0, window_bounds = array<i64: 8, 8>}, {pipeline_mode = #tpu.pipeline_mode<synchronous>, transform_indices = @transform_1, window_bounds = array<i64: 8, 16>}, {pipeline_mode = #tpu.pipeline_mode<synchronous>, transform_indices = @transform_2, window_bounds = array<i64: 1, 16>}, {pipeline_mode = #tpu.pipeline_mode<synchronous>, transform_indices = @transform_3, window_bounds = array<i64: 16, 6>}, {pipeline_mode = #tpu.pipeline_mode<synchronous>, transform_indices = @transform_4, window_bounds = array<i64: 1, 6>}, {transform_indices = @transform_5, window_bounds = array<i64: 8, 6>}]} {
    %c0 = arith.constant 0 : index
    %c0_0 = arith.constant 0 : index
    %0 = vector.load %arg1[%c0, %c0_0] : memref<8x8xf32, #tpu.memory_space<vmem>>, vector<8x8xf32>
    %c0_1 = arith.constant 0 : index
    %c0_2 = arith.constant 0 : index
    %1 = vector.load %arg2[%c0_1, %c0_2] : memref<8x16xf32, #tpu.memory_space<vmem>>, vector<8x16xf32>
    %cst = arith.constant dense<0.000000e+00> : vector<8x16xf32>
    %2 = tpu.matmul %0, %1, %cst {dimension_numbers = #tpu.dot_dimension_numbers<[1], [0], [0], [1], [0, 0, 1, 1], [], []>} : vector<8x8xf32>, vector<8x16xf32>, vector<8x16xf32> -> vector<8x16xf32>
    %c0_3 = arith.constant 0 : index
    %c0_4 = arith.constant 0 : index
    %3 = vector.load %arg3[%c0_3, %c0_4] : memref<1x16xf32, #tpu.memory_space<vmem>>, vector<1x16xf32>
    %4 = vector.broadcast %3 : vector<1x16xf32> to vector<8x16xf32>
    %5 = arith.addf %2, %4 : vector<8x16xf32>
    %cst_5 = arith.constant 0.000000e+00 : f32
    %6 = vector.broadcast %cst_5 : f32 to vector<8x16xf32>
    %7 = arith.maximumf %5, %6 : vector<8x16xf32>
    %c0_6 = arith.constant 0 : index
    %c0_7 = arith.constant 0 : index
    %8 = vector.load %arg4[%c0_6, %c0_7] : memref<16x6xf32, #tpu.memory_space<vmem>>, vector<16x6xf32>
    %cst_8 = arith.constant dense<0.000000e+00> : vector<8x6xf32>
    %9 = tpu.matmul %7, %8, %cst_8 {dimension_numbers = #tpu.dot_dimension_numbers<[1], [0], [0], [1], [0, 0, 1, 1], [], []>} : vector<8x16xf32>, vector<16x6xf32>, vector<8x6xf32> -> vector<8x6xf32>
    %c0_9 = arith.constant 0 : index
    %c0_10 = arith.constant 0 : index
    %10 = vector.load %arg5[%c0_9, %c0_10] : memref<1x6xf32, #tpu.memory_space<vmem>>, vector<1x6xf32>
    %11 = vector.broadcast %10 : vector<1x6xf32> to vector<8x6xf32>
    %12 = arith.addf %9, %11 : vector<8x6xf32>
    %c0_11 = arith.constant 0 : index
    %c0_12 = arith.constant 0 : index
    %13 = vector.load %arg6[%c0_11, %c0_12] : memref<8x6xf32, #tpu.memory_space<vmem>>, vector<8x6xf32>
    tpu.vector_store %arg6[%c0_11, %c0_12], %12 {strides = array<i32>} : memref<8x6xf32, #tpu.memory_space<vmem>>, vector<8x6xf32>,
    return
  }
  func.func @transform_0(%arg0: i32) -> (i32, i32) {
    %c0_i32 = arith.constant 0 : i32
    %c0_i32_0 = arith.constant 0 : i32
    return %arg0, %c0_i32 : i32, i32
  }
  func.func @transform_1(%arg0: i32) -> (i32, i32) {
    %c0_i32 = arith.constant 0 : i32
    %c0_i32_0 = arith.constant 0 : i32
    %c0_i32_1 = arith.constant 0 : i32
    return %c0_i32, %c0_i32_0 : i32, i32
  }
  func.func @transform_2(%arg0: i32) -> (i32, i32) {
    %c0_i32 = arith.constant 0 : i32
    %c0_i32_0 = arith.constant 0 : i32
    %c0_i32_1 = arith.constant 0 : i32
    return %c0_i32, %c0_i32_0 : i32, i32
  }
  func.func @transform_3(%arg0: i32) -> (i32, i32) {
    %c0_i32 = arith.constant 0 : i32
    %c0_i32_0 = arith.constant 0 : i32
    %c0_i32_1 = arith.constant 0 : i32
    return %c0_i32, %c0_i32_0 : i32, i32
  }
  func.func @transform_4(%arg0: i32) -> (i32, i32) {
    %c0_i32 = arith.constant 0 : i32
    %c0_i32_0 = arith.constant 0 : i32
    %c0_i32_1 = arith.constant 0 : i32
    return %c0_i32, %c0_i32_0 : i32, i32
  }
  func.func @transform_5(%arg0: i32) -> (i32, i32) {
    %c0_i32 = arith.constant 0 : i32
    %c0_i32_0 = arith.constant 0 : i32
    return %arg0, %c0_i32 : i32, i32
  }
}

</mosaic_0001>

<bundles_post_ra>
// kernel: tpu_custom_call.1
= control target key start
LH: loop header
LB: loop body
LE: loop exit
PB: predicated region body
PF: predicated region fallthrough
CT: control target
= control target key end

     0   :  { %vm27_vm0 = vcmask 64512   ;;  %s183_s0 = inlined_call_operand.vmem [shape: f32[8,8], index: 0, kind: input, shape index: {}]   ;;  %s184_s1 = inlined_call_operand.vmem [shape: f32[8,16], index: 1, kind: input, shape index: {}]   ;;  %s185_s2 = inlined_call_operand.vmem [shape: f32[1,16], index: 2, kind: input, shape index: {}]   ;;  %s186_s3 = inlined_call_operand.vmem [shape: f32[16,6], index: 3, kind: input, shape index: {}]   ;;  %s187_s4 = inlined_call_operand.vmem [shape: f32[1,6], index: 4, kind: input, shape index: {}]   ;;  %s188_s5 = inlined_call_operand.hbm [shape: f32[8,6], index: 5, kind: output, shape index: {}]  }
   0x1   :  { %v22_v0 = vld [vmem:[%s184_s1] sm:$0xff] }
   0x2   :  { %v21_v1 = vld [vmem:[%s183_s0] sm:$0xff]  ;;  %46 = vmatpush.msra.mxu0 %v22_v0 }
   0x3   :  { %10 = vsyncpa [#allocation3], 0  ;;  %100 = vmatmul.msk.f32.vlgmr.msra.gmra.mxu0 %vm27_vm0, %v21_v1  ;;  %v53_v2 = vld [vmem:[%s186_s3 + $0x8] sm:$0xff]  ;;  %v52_v3 = vld [vmem:[%s186_s3] sm:$0xff]  ;;  %vm58_vm1 = vcmask 130048   ;;  %s131_s28 = smov [#allocation2]  }
   0x4   :  { %76 = vmatpush.msra.mxu1 %v53_v2  ;;  %v103_v4 = vld [vmem:[%s185_s2] ss:$0 sm:$0xff]  ;;  %s89_s29 = sshll.u32 %s131_s28, 4  ;;  %s91_s3 = sshll.u32 %s188_s5, 4  ;;  %vm82_vm2 = vcmask 48128   ;;  %s90_s29 = int_to_ptr.vmem [resolvable:$true] %s89_s29  ;;  %s92_s3 = int_to_ptr.hbm [resolvable:$true] %s91_s3 }
   0x5   :  { %v104_v8 = vld [vmem:[%s187_s4] ss:$0 sm:$0xff] }
   0x6   :  { %77 = vmatpush.msra.mxu1 %v52_v3 }
  0x80   :  { %v48_v5 = vpop.f32.mrf.mxu0 }
  0x81   :  { %v49_v6 = vadd.f32 %v103_v4, %v48_v5 }
  0x83   :  { %v51_v7 = vmax.f32 %v49_v6, 0.0 }
  0x85   :  { %101 = vmatmul.msk.f32.vlgmr.msra.gmra.mxu1 %vm58_vm1, %v51_v7 }
 0x102   :  { %v79_v9 = vpop.f32.mrf.mxu1 }
 0x103   :  { %v80_v10 = vadd.f32 %v104_v8, %v79_v9 }
 0x105   :  { %83 = vst.msk [vmem:[#allocation2] sm:$0xff] %vm82_vm2, %v80_v10 }
 0x106   :  { %94 = dma.vmem_to_hbm [thread:$0]  %s90_s29, 128, %s92_s3, [#allocation3]  }
 0x107   :  { %129 = dma.done.wait [#allocation3], 128  }
 0x108   :  { %130 = vsyncadd [#allocation3], 4294967168 }
 0x109   :  { %99 = vsyncpa [#allocation3], 1 }

</bundles_post_ra>
